<compile_context>
chip_gen: v7x
topology: tpu7x:2x2x1
jax: 0.10.0
libtpu: 0.0.40
codegen_flags: <defaults>
</compile_context>

<pallas_src>
import jax
import jax.numpy as jnp
from jax.experimental import pallas as pl
from jax.experimental.pallas import tpu as pltpu


def _mask_mean_kernel(nt_ref, lens_ref, x_ref, o_ref, acc_ref):
    """One grid step = one (batch-block, time-tile) pair.

    nt_ref   : SMEM (nb,) int32   -- #useful T tiles per batch block (prefetched)
    lens_ref : VMEM (BB, 1) int32 -- per-row valid lengths
    x_ref    : VMEM (BB, TT, D)   -- input tile
    o_ref    : VMEM (BB, D)       -- output tile (resident across the T axis)
    acc_ref  : VMEM (BB, D) f32   -- scratch accumulator
    """
    b = pl.program_id(0)
    k = pl.program_id(1)
    nk = pl.num_programs(1)
    _, TT, _ = x_ref.shape

    @pl.when(k == 0)
    def _init():
        acc_ref[...] = jnp.zeros_like(acc_ref)

    # Skip tiles that are entirely past every row's valid length in this block.
    @pl.when(k < nt_ref[b])
    def _accumulate():
        x = x_ref[...].astype(jnp.float32)                       # (BB, TT, D)
        lens = lens_ref[...]                                     # (BB, 1) int32
        t_idx = k * TT + jax.lax.broadcasted_iota(jnp.int32, (1, TT, 1), 1)
        valid = t_idx < lens[:, :, None]                         # (BB, TT, 1)
        acc_ref[...] += jnp.sum(jnp.where(valid, x, 0.0), axis=1)

    @pl.when(k == nk - 1)
    def _finalize():
        # One divide per row, then broadcast multiply (instead of D-wide divide).
        # Length == 0 gives inf/nan, matching the PyTorch reference hazard.
        inv = 1.0 / lens_ref[...].astype(jnp.float32)            # (BB, 1)
        o_ref[...] = (acc_ref[...] * inv).astype(o_ref.dtype)


def _choose_block_t(T, D, itemsize, block_b, target_bytes):
    """Largest multiple-of-8 time tile keeping one input block ~target_bytes."""
    bytes_per_t = block_b * D * itemsize
    tt = max(8, (target_bytes // max(bytes_per_t, 1)) // 8 * 8)
    if tt >= T:
        return int(T)
    return int(tt)


def mask_and_mean(convd_speech, chunk_timestep_len, max_pad=None, *,
                  block_b=8, block_t=None, target_block_bytes=2 * 1024 * 1024):
    """JAX/Pallas masked mean over the time axis. x: (B, T, D) -> (B, D)."""
    x = jnp.asarray(convd_speech)
    B, T, D = x.shape
    out_dtype = x.dtype
    lens = jnp.asarray(chunk_timestep_len).reshape(-1).astype(jnp.int32)  # (B,)

    # Pad batch to a multiple of the batch block so the (BB, D) output block is
    # full-sublane. Padded rows get length 1 (avoid 0-div) and are sliced off.
    BB = int(block_b)
    Bp = ((B + BB - 1) // BB) * BB
    if Bp != B:
        x = jnp.pad(x, ((0, Bp - B), (0, 0), (0, 0)))
        lens = jnp.pad(lens, (0, Bp - B), constant_values=1)
    nb = Bp // BB

    # Time tile: multiple of 8 (or full T), sized so a block is ~2 MB.
    if block_t is None:
        TT = _choose_block_t(T, D, x.dtype.itemsize, BB, target_block_bytes)
    else:
        TT = min(int(block_t), T)
        if TT < T:
            TT = max(8, (TT // 8) * 8)
    nk = (T + TT - 1) // TT

    lens_2d = lens.reshape(Bp, 1)
    # Number of useful T tiles per batch block (>=1, <=nk); used to clamp the
    # index_map so fully padded tiles are never streamed from HBM.
    blk_max = lens.reshape(nb, BB).max(axis=1)
    nt_blocks = jnp.clip((blk_max + TT - 1) // TT, 1, nk).astype(jnp.int32)

    out = pl.pallas_call(
        _mask_mean_kernel,
        out_shape=jax.ShapeDtypeStruct((Bp, D), out_dtype),
        grid_spec=pltpu.PrefetchScalarGridSpec(
            num_scalar_prefetch=1,
            grid=(nb, nk),
            in_specs=[
                pl.BlockSpec((BB, 1), lambda b, k, nt: (b, 0)),
                pl.BlockSpec(
                    (BB, TT, D),
                    lambda b, k, nt: (b, jnp.minimum(k, nt[b] - 1), 0)),
            ],
            out_specs=pl.BlockSpec((BB, D), lambda b, k, nt: (b, 0)),
            scratch_shapes=[pltpu.VMEM((BB, D), jnp.float32)],
        ),
        compiler_params=pltpu.CompilerParams(
            dimension_semantics=("parallel", "arbitrary")),
    )(nt_blocks, lens_2d, x)

    return out[:B]


class MaskAndMean:
    """JAX/Pallas equivalent of the PyTorch Mask_and_Mean module."""

    def __init__(self, hidden_dim, kernel_size, stride):
        # Module has no trainable parameters; attrs kept for parity.
        self.hidden_dim = hidden_dim
        self.kernel_size = kernel_size
        self.stride = stride

    def __call__(self, convd_speech, chunk_timestep_len, max_pad):
        # max_pad is unused in the reference forward as well.
        return mask_and_mean(convd_speech, chunk_timestep_len, max_pad)


def _reference(x, lens):
    T = x.shape[1]
    valid = jnp.arange(T)[None, :, None] < lens[:, None, None]
    return jnp.where(valid, x, 0.0).sum(axis=1) / lens[:, None].astype(x.dtype)


if __name__ == "__main__":
    key = jax.random.PRNGKey(0)
    k1, k2 = jax.random.split(key)

    # --- Test 1: module-style call at the original small demo shape ---------
    B, T, D = 2, 16, 32
    hidden_dim, kernel_size, stride = D, 3, 2
    x = jax.random.normal(k1, (B, T, D), dtype=jnp.float32)
    chunk_timestep_len = jnp.array([[5], [16]], dtype=jnp.int32)
    max_pad = T  # unused by forward

    module = MaskAndMean(hidden_dim, kernel_size, stride)
    agg = module(x, chunk_timestep_len, max_pad)
    agg = jax.block_until_ready(agg)

    ref = _reference(x, chunk_timestep_len.reshape(-1))
    assert agg.shape == (B, D)
    assert jnp.allclose(agg, ref, atol=1e-5, rtol=1e-5)

    # --- Test 2: exercises batch padding, T tiling, partial last tile and ---
    # --- padded-tile skipping (clamped index_map).                        ---
    B2, T2, D2 = 10, 40, 128
    x2 = jax.random.normal(k2, (B2, T2, D2), dtype=jnp.float32)
    lens2 = jnp.array([1, 5, 16, 17, 32, 33, 40, 40, 7, 23], dtype=jnp.int32)
    agg2 = mask_and_mean(x2, lens2.reshape(B2, 1), None, block_t=16)
    agg2 = jax.block_until_ready(agg2)

    ref2 = _reference(x2, lens2)
    assert agg2.shape == (B2, D2)
    assert jnp.allclose(agg2, ref2, atol=1e-5, rtol=1e-5)

    print("KERNEL_OK")
</pallas_src>

<mosaic_0001>
module attributes {stable_mosaic.version = 11 : i64} {
  func.func @_mask_mean_kernel(%arg0: i32, %arg1: i32, %arg2: memref<1xi32, #tpu.memory_space<smem>>, %arg3: memref<8x1xi32, #tpu.memory_space<vmem>>, %arg4: memref<8x16x32xf32, #tpu.memory_space<vmem>>, %arg5: memref<8x32xf32, #tpu.memory_space<vmem>>, %arg6: memref<8x32xf32, #tpu.memory_space<vmem>>) attributes {dimension_semantics = [#tpu.dimension_semantics<parallel>, #tpu.dimension_semantics<arbitrary>], iteration_bounds = array<i64: 1, 1>, scalar_prefetch = 1 : i64, scratch_operands = 1 : i64, tpu.core_type = #tpu.core_type<tc>, window_params = [{transform_indices = @transform_0, window_bounds = array<i64: 8, 1>}, {transform_indices = @transform_1, window_bounds = array<i64: 8, 16, 32>}, {transform_indices = @transform_2, window_bounds = array<i64: 8, 32>}]} {
    %c0_i32 = arith.constant 0 : i32
    %0 = arith.cmpi eq, %arg1, %c0_i32 : i32
    %1 = arith.extui %0 : i1 to i32
    %c0_i32_0 = arith.constant 0 : i32
    %2 = arith.cmpi ne, %1, %c0_i32_0 : i32
    scf.if %2 {
      %cst = arith.constant 0.000000e+00 : f32
      %11 = vector.broadcast %cst : f32 to vector<8x32xf32>
      %c0 = arith.constant 0 : index
      %c0_4 = arith.constant 0 : index
      %12 = vector.load %arg6[%c0, %c0_4] : memref<8x32xf32, #tpu.memory_space<vmem>>, vector<8x32xf32>
      tpu.vector_store %arg6[%c0, %c0_4], %11 {strides = array<i32>} : memref<8x32xf32, #tpu.memory_space<vmem>>, vector<8x32xf32>,
    } else {
    }
    %3 = arith.index_cast %arg0 : i32 to index
    %4 = memref.load %arg2[%3] : memref<1xi32, #tpu.memory_space<smem>>
    %5 = arith.cmpi slt, %arg1, %4 : i32
    %6 = arith.extui %5 : i1 to i32
    %c0_i32_1 = arith.constant 0 : i32
    %7 = arith.cmpi ne, %6, %c0_i32_1 : i32
    scf.if %7 {
      %c0 = arith.constant 0 : index
      %c0_4 = arith.constant 0 : index
      %c0_5 = arith.constant 0 : index
      %11 = vector.load %arg4[%c0, %c0_4, %c0_5] : memref<8x16x32xf32, #tpu.memory_space<vmem>>, vector<8x16x32xf32>
      %c0_6 = arith.constant 0 : index
      %c0_7 = arith.constant 0 : index
      %12 = vector.load %arg3[%c0_6, %c0_7] : memref<8x1xi32, #tpu.memory_space<vmem>>, vector<8x1xi32>
      %c16_i32 = arith.constant 16 : i32
      %13 = arith.muli %arg1, %c16_i32 : i32
      %14 = tpu.iota {dimensions = array<i32: 1>} : vector<1x16x1xi32>
      %15 = vector.broadcast %13 : i32 to vector<1x16x1xi32>
      %16 = arith.addi %15, %14 : vector<1x16x1xi32>
      %17 = vector.shape_cast %12 : vector<8x1xi32> to vector<8x1x1xi32>
      %18 = vector.broadcast %16 : vector<1x16x1xi32> to vector<8x16x1xi32>
      %19 = vector.broadcast %17 : vector<8x1x1xi32> to vector<8x16x1xi32>
      %20 = arith.cmpi slt, %18, %19 : vector<8x16x1xi32>
      %c0_8 = arith.constant 0 : index
      %c0_9 = arith.constant 0 : index
      %21 = vector.load %arg6[%c0_8, %c0_9] : memref<8x32xf32, #tpu.memory_space<vmem>>, vector<8x32xf32>
      %cst = arith.constant 0.000000e+00 : f32
      %22 = vector.shape_cast %20 : vector<8x16x1xi1> to vector<8x16x1xi1>
      %23 = vector.broadcast %22 : vector<8x16x1xi1> to vector<8x16x32xi1>
      %24 = vector.broadcast %cst : f32 to vector<8x16x32xf32>
      %25 = arith.select %23, %11, %24 : vector<8x16x32xi1>, vector<8x16x32xf32>
      %cst_10 = arith.constant dense<0.000000e+00> : vector<8x32xf32>
      %26 = vector.multi_reduction <add>, %25, %cst_10 [1] : vector<8x16x32xf32> to vector<8x32xf32>
      %27 = arith.addf %21, %26 : vector<8x32xf32>
      %c0_11 = arith.constant 0 : index
      %c0_12 = arith.constant 0 : index
      %28 = vector.load %arg6[%c0_11, %c0_12] : memref<8x32xf32, #tpu.memory_space<vmem>>, vector<8x32xf32>
      tpu.vector_store %arg6[%c0_11, %c0_12], %27 {strides = array<i32>} : memref<8x32xf32, #tpu.memory_space<vmem>>, vector<8x32xf32>,
    } else {
    }
    %c0_i32_2 = arith.constant 0 : i32
    %8 = arith.cmpi eq, %arg1, %c0_i32_2 : i32
    %9 = arith.extui %8 : i1 to i32
    %c0_i32_3 = arith.constant 0 : i32
    %10 = arith.cmpi ne, %9, %c0_i32_3 : i32
    scf.if %10 {
      %c0 = arith.constant 0 : index
      %c0_4 = arith.constant 0 : index
      %11 = vector.load %arg3[%c0, %c0_4] : memref<8x1xi32, #tpu.memory_space<vmem>>, vector<8x1xi32>
      %12 = arith.sitofp %11 : vector<8x1xi32> to vector<8x1xf32>
      %cst = arith.constant 1.000000e+00 : f32
      %13 = vector.broadcast %cst : f32 to vector<8x1xf32>
      %14 = arith.divf %13, %12 : vector<8x1xf32>
      %c0_5 = arith.constant 0 : index
      %c0_6 = arith.constant 0 : index
      %15 = vector.load %arg6[%c0_5, %c0_6] : memref<8x32xf32, #tpu.memory_space<vmem>>, vector<8x32xf32>
      %16 = vector.broadcast %14 : vector<8x1xf32> to vector<8x32xf32>
      %17 = arith.mulf %15, %16 : vector<8x32xf32>
      %c0_7 = arith.constant 0 : index
      %c0_8 = arith.constant 0 : index
      %18 = vector.load %arg5[%c0_7, %c0_8] : memref<8x32xf32, #tpu.memory_space<vmem>>, vector<8x32xf32>
      tpu.vector_store %arg5[%c0_7, %c0_8], %17 {strides = array<i32>} : memref<8x32xf32, #tpu.memory_space<vmem>>, vector<8x32xf32>,
    } else {
    }
    return
  }
  func.func @transform_0(%arg0: i32, %arg1: i32, %arg2: memref<1xi32, #tpu.memory_space<smem>>) -> (i32, i32) {
    %c0_i32 = arith.constant 0 : i32
    %c0_i32_0 = arith.constant 0 : i32
    return %arg0, %c0_i32 : i32, i32
  }
  func.func @transform_1(%arg0: i32, %arg1: i32, %arg2: memref<1xi32, #tpu.memory_space<smem>>) -> (i32, i32, i32) {
    %0 = arith.index_cast %arg0 : i32 to index
    %1 = memref.load %arg2[%0] : memref<1xi32, #tpu.memory_space<smem>>
    %c1_i32 = arith.constant 1 : i32
    %2 = arith.subi %1, %c1_i32 : i32
    %3 = arith.minsi %arg1, %2 : i32
    %c0_i32 = arith.constant 0 : i32
    %c0_i32_0 = arith.constant 0 : i32
    return %arg0, %3, %c0_i32 : i32, i32, i32
  }
  func.func @transform_2(%arg0: i32, %arg1: i32, %arg2: memref<1xi32, #tpu.memory_space<smem>>) -> (i32, i32) {
    %c0_i32 = arith.constant 0 : i32
    %c0_i32_0 = arith.constant 0 : i32
    return %arg0, %c0_i32 : i32, i32
  }
}

</mosaic_0001>

<bundles_post_ra>
// kernel: tpu_custom_call.1
= control target key start
LH: loop header
LB: loop body
LE: loop exit
PB: predicated region body
PF: predicated region fallthrough
CT: control target
= control target key end

     0   :  { %9 = vsyncpa [#allocation6], 0  ;;  %s592_s0 = inlined_call_operand.<no memory space> [shape: s32[1], index: 0, kind: input, shape index: {}]   ;;  %s593_s1 = inlined_call_operand.vmem [shape: s32[8,1], index: 1, kind: input, shape index: {}]   ;;  %s594_s2 = inlined_call_operand.hbm [shape: f32[8,16,32], index: 2, kind: input, shape index: {}]   ;;  %s595_s3 = inlined_call_operand.hbm [shape: f32[8,32], index: 3, kind: output, shape index: {}]  }
   0x1   :  { %10 = vsyncpa [#allocation7], 0  ;;  %s400_s14 = sadd.s32 4294967295, %s592_s0  ;;  %s471_s15 = smov [#allocation5]  }
   0x2   :  { %p401_p0 = scmp.gt.s32.totalorder %s400_s14, 0  ;;  %s25_s16 = sshll.u32 %s471_s15, 4  ;;  %s26_s16 = int_to_ptr.vmem [resolvable:$true] %s25_s16 }
   0x3   :  { %s423_s24 = scalar_lea.hbm %s594_s2, 2048 }
   0x4   :  { %s597_s14 = smov (%p401_p0, %s400_s14), 0 }
   0x5   :  { %s406_s17 = sshll.u32 %s597_s14, 8 }
   0x6   :  { %s24_s20 = scalar_lea.hbm %s594_s2, %s406_s17 }
   0x7   :  { %s421_s21 = scalar_lea.hbm %s24_s20, 2048  ;;  %p424_p2 = scmp.lt.u32.totalorder %s24_s20, %s594_s2 }
   0x8   :  { %p422_p1 = scmp.ne.s32.totalorder %s24_s20, %s421_s21  ;;  %p425_p3 = scmp.lt.u32.totalorder %s423_s24, %s421_s21 }
   0x9   :  { %p427_p5 = scmp.lt.u32.totalorder %s421_s21, %s24_s20 }
   0xa   :  { %p426_p4 = por %p425_p3, %p424_p2 }
   0xc   :  { %p428_p6 = por %p427_p5, %p426_p4 }
   0xe   :  { %p429_p7 = pnand %p428_p6, %p422_p1 }
  0x10   :  { %432 = shalt.err (!%p429_p7)
}
  0x11   :  { %s433_s27 = scalar_lea.vmem %s26_s16, 2048  ;;  %p438_p9 = scmp.lt.s32.totalorder %s26_s16, %s26_s16 }
  0x12   :  { %p434_p8 = scmp.ne.s32.totalorder %s26_s16, %s433_s27  ;;  %p439_p10 = scmp.lt.s32.totalorder %s433_s27, %s433_s27 }
  0x14   :  { %p440_p11 = por %p439_p10, %p438_p9 }
  0x16   :  { %p441_p12 = pnand %p440_p11, %p434_p8 }
  0x18   :  { %444 = shalt.err (!%p441_p12)
}
  0x19   :  { %s472_s28 = smov 128   ;;  %s473_s29 = smov 8  }
  0x1a   :  { %31 = dma.hbm_to_vmem [thread:$0]  %s24_s20, 2048, %s26_s16, [#allocation6], %s472_s28, %s472_s28, %s473_s29  }
  0x1b   :  { %467 = dma.done.wait [#allocation6], 2048  }
  0x1c   :  { %468 = vsyncadd [#allocation6], 4294965248  ;;  %vm44_vm0 = vcmask 261120   ;;  %v474_v0 = vmov 0.0   ;;  %p405_p13 = scmp.le.s32.totalorder %s592_s0, 0 }
  0x1d   :  { %45 = vst.msk [vmem:[#allocation2] sm:$0xff] %vm44_vm0, %v474_v0  ;;  %v67_v1 = vld [vmem:[%s593_s1] sm:$0xff] (!%p405_p13)  ;;  %v69_v2 = vlaneseq (!%p405_p13)  ;;  %v475_v3 = vmov (!%p405_p13), 0   ;;  %v476_v4 = vmov (!%p405_p13), 1966171168   ;;  %v51_v50 = vld [vmem:[#allocation5] sm:$0xff] (!%p405_p13) }
  0x1e   :  { %50 = sbr.rel (%p405_p13) target bundleno = 221 (0xdd), region = 21  ;;  %416 = vset.pattern.permute.xlu1 (!%p405_p13), %v475_v3  ;;  %415 = vset.pattern.permute.xlu0 (!%p405_p13), %v475_v3  ;;  %v77_v5 = vunpack.c.l.s4 (!%p405_p13), %v476_v4  ;;  %v75_v8 = vcombine.high (!%p405_p13), %v67_v1, %v67_v1  ;;  %v52_v51 = vld [vmem:[#allocation5 + $0x8] sm:$0xff] (!%p405_p13)  ;;  %v53_v54 = vld [vmem:[#allocation5 + $0x10] sm:$0xff] (!%p405_p13)  ;;  %v54_v58 = vld [vmem:[#allocation5 + $0x18] sm:$0xff] (!%p405_p13) }
  0x1f   :  { %v520_v6 = vshrl.u32 (!%p405_p13), %v69_v2, 7  ;;  %v59_v59 = vld [vmem:[#allocation5 + $0x40] sm:$0xff] (!%p405_p13)  ;;  %v60_v0 = vld [vmem:[#allocation5 + $0x48] sm:$0xff] (!%p405_p13) }
  0x20   :  { %v78_v7 = vunpack.c.0.s8 (!%p405_p13), %v77_v5 }
  0x21   :  { %v126_v11 = vsub.s32 (!%p405_p13), 0, %v520_v6  ;;  %v525_v14 = vadd.s32 (!%p405_p13), 8, %v520_v6 }
  0x22   :  { %v81_v9 = vsub.s32 (!%p405_p13), %v78_v7, %v520_v6 }
  0x24   :  { %v82_v10 = vrot.slane (!%p405_p13), %v67_v1, %v81_v9  ;;  %v89_v12 = vrot.slane (!%p405_p13), %v75_v8, %v81_v9 }
  0x26   :  { %v98_v13 = vrot.slane %v82_v10, %v81_v9  ;;  %v105_v15 = vrot.slane %v89_v12, %v81_v9  ;;  %v90_v16 = vcombine.high %v82_v10, %v82_v10  ;;  %v91_v26 = vcombine.high %v89_v12, %v89_v12 }
  0x28   :  { %v127_v17 = vrot.slane %v98_v13, %v126_v11  ;;  %v143_v18 = vrot.slane %v105_v15, %v126_v11  ;;  %v112_v19 = vrot.slane %v90_v16, %v81_v9  ;;  %v120_v20 = vcombine.high %v98_v13, %v98_v13 }
  0x29   :  { %v119_v32 = vrot.slane %v91_v26, %v81_v9  ;;  %v121_v36 = vcombine.high %v105_v15, %v105_v15 }
  0x2a   :  { %vm156_vm1 = vcmp.lt.s32.totalorder %v520_v6, %v127_v17  ;;  %vm165_vm2 = vcmp.lt.s32.totalorder %v525_v14, %v143_v18  ;;  %vm157_vm3 = vcmp.lt.s32.totalorder %v525_v14, %v127_v17  ;;  %v131_v21 = vrot.slane %v112_v19, %v126_v11 }
  0x2b   :  { %v173_v22 = vsel %vm156_vm1, 1, %v475_v3  ;;  %v182_v23 = vsel %vm165_vm2, 1, %v475_v3  ;;  %v174_v24 = vsel %vm157_vm3, 1, %v475_v3  ;;  %vm164_vm6 = vcmp.lt.s32.totalorder %v520_v6, %v143_v18 }
  0x2c   :  { %190 = vperm.xlu0 %415, %v173_v22   ;;  %217 = vperm.xlu1 %416, %v182_v23   ;;  %vm158_vm4 = vcmp.lt.s32.totalorder %v520_v6, %v131_v21  ;;  %vm159_vm5 = vcmp.lt.s32.totalorder %v525_v14, %v131_v21  ;;  %v135_v27 = vrot.slane %v120_v20, %v126_v11  ;;  %v181_v30 = vsel %vm164_vm6, 1, %v475_v3 }
  0x2d   :  { %v175_v25 = vsel %vm158_vm4, 1, %v475_v3  ;;  %v122_v28 = vcombine.high %v112_v19, %v112_v19  ;;  %v176_v29 = vsel %vm159_vm5, 1, %v475_v3  ;;  %v147_v35 = vrot.slane %v119_v32, %v126_v11  ;;  %v58_v19 = vld [vmem:[#allocation5 + $0x38] sm:$0xff] }
  0x2e   :  { %vm161_vm7 = vcmp.lt.s32.totalorder %v525_v14, %v135_v27  ;;  %vm160_vm8 = vcmp.lt.s32.totalorder %v520_v6, %v135_v27  ;;  %v151_v39 = vrot.slane %v121_v36, %v126_v11  ;;  %v123_v40 = vcombine.high %v119_v32, %v119_v32  ;;  %v62_v32 = vld [vmem:[#allocation5 + $0x58] sm:$0xff] }
  0x2f   :  { %v139_v31 = vrot.slane %v122_v28, %v126_v11  ;;  %v178_v33 = vsel %vm161_vm7, 1, %v475_v3  ;;  %v177_v34 = vsel %vm160_vm8, 1, %v475_v3  ;;  %vm167_vm11 = vcmp.lt.s32.totalorder %v525_v14, %v147_v35 }
  0x30   :  { %193 = vperm.xlu0 %415, %v174_v24   ;;  %196 = vperm.xlu1 %416, %v175_v25   ;;  %vm166_vm12 = vcmp.lt.s32.totalorder %v520_v6, %v147_v35  ;;  %v184_v41 = vsel %vm167_vm11, 1, %v475_v3  ;;  %vm169_vm13 = vcmp.lt.s32.totalorder %v525_v14, %v151_v39  ;;  %vm168_vm14 = vcmp.lt.s32.totalorder %v520_v6, %v151_v39  ;;  %v57_v25 = vld [vmem:[#allocation5 + $0x30] sm:$0xff] }
  0x31   :  { %vm163_vm9 = vcmp.lt.s32.totalorder %v525_v14, %v139_v31  ;;  %vm162_vm10 = vcmp.lt.s32.totalorder %v520_v6, %v139_v31  ;;  %v183_v42 = vsel %vm166_vm12, 1, %v475_v3  ;;  %v155_v43 = vrot.slane %v123_v40, %v126_v11  ;;  %v55_v11 = vld [vmem:[#allocation5 + $0x20] sm:$0xff] }
  0x32   :  { %v180_v37 = vsel %vm163_vm9, 1, %v475_v3  ;;  %v179_v38 = vsel %vm162_vm10, 1, %v475_v3  ;;  %v186_v44 = vsel %vm169_vm13, 1, %v475_v3  ;;  %v185_v45 = vsel %vm168_vm14, 1, %v475_v3 }
  0x33   :  { %vm171_vm15 = vcmp.lt.s32.totalorder %v525_v14, %v155_v43  ;;  %vm170_vm1 = vcmp.lt.s32.totalorder %v520_v6, %v155_v43  ;;  %v56_v6 = vld [vmem:[#allocation5 + $0x28] sm:$0xff] }
  0x34   :  { %199 = vperm.xlu1 %416, %v176_v29   ;;  %214 = vperm.xlu0 %415, %v181_v30   ;;  %v188_v46 = vsel %vm171_vm15, 1, %v475_v3  ;;  %v187_v47 = vsel %vm170_vm1, 1, %v475_v3 }
  0x38   :  { %205 = vperm.xlu1 %416, %v178_v33   ;;  %202 = vperm.xlu0 %415, %v177_v34   ;;  %v61_v33 = vld [vmem:[#allocation5 + $0x50] sm:$0xff] }
  0x3c   :  { %211 = vperm.xlu1 %416, %v180_v37   ;;  %208 = vperm.xlu0 %415, %v179_v38  }
  0x40   :  { %223 = vperm.xlu1 %416, %v184_v41   ;;  %220 = vperm.xlu0 %415, %v183_v42  }
  0x44   :  { %229 = vperm.xlu1 %416, %v186_v44   ;;  %226 = vperm.xlu0 %415, %v185_v45  }
  0x48   :  { %235 = vperm.xlu1 %416, %v188_v46   ;;  %232 = vperm.xlu0 %415, %v187_v47  }
  0xab   :  { %v191_v48 = vpop.permute.xlu0 %190  ;;  %v218_v49 = vpop.permute.xlu1 %217 }
  0xac   :  { %vm237_vm2 = vcmp.eq.s32.totalorder %v191_v48, 1  ;;  %vm246_vm5 = vcmp.eq.s32.totalorder %v218_v49, 1  ;;  %v64_v48 = vld [vmem:[#allocation5 + $0x68] sm:$0xff]  ;;  %v63_v49 = vld [vmem:[#allocation5 + $0x60] sm:$0xff] }
  0xad   :  { %v253_v55 = vsel %vm237_vm2, %v51_v50, 0.0  ;;  %v262_v7 = vsel %vm246_vm5, %v60_v0, 0.0  ;;  %v66_v0 = vld [vmem:[#allocation5 + $0x78] sm:$0xff]  ;;  %vm354_vm5 = vcmask 1043459  }
  0xae   :  { %v270_v63 = vsel %vm44_vm0, %v253_v55, 0.0  ;;  %v307_v16 = vsel %vm44_vm0, %v262_v7, 0.0 }
  0xaf   :  { %v194_v52 = vpop.permute.xlu0 %193  ;;  %v197_v53 = vpop.permute.xlu1 %196 }
  0xb0   :  { %vm238_vm3 = vcmp.eq.s32.totalorder %v194_v52, 1  ;;  %vm239_vm4 = vcmp.eq.s32.totalorder %v197_v53, 1 }
  0xb1   :  { %v254_v56 = vsel %vm238_vm3, %v52_v51, 0.0  ;;  %v255_v60 = vsel %vm239_vm4, %v53_v54, 0.0  ;;  %vm350_vm3 = vcmask 1041409   ;;  %vm352_vm4 = vcmask 1042434  }
  0xb2   :  { %v271_v57 = vsel %vm44_vm0, %v254_v56, 0.0  ;;  %v279_v4 = vsel %vm44_vm0, %v255_v60, 0.0 }
  0xb3   :  { %v200_v61 = vpop.permute.xlu1 %199  ;;  %v215_v62 = vpop.permute.xlu0 %214  ;;  %v272_v1 = vadd.f32 %v271_v57, %v270_v63 }
  0xb4   :  { %vm240_vm6 = vcmp.eq.s32.totalorder %v200_v61, 1  ;;  %vm245_vm7 = vcmp.eq.s32.totalorder %v215_v62, 1 }
  0xb5   :  { %v256_v2 = vsel %vm240_vm6, %v54_v58, 0.0  ;;  %v261_v3 = vsel %vm245_vm7, %v59_v59, 0.0  ;;  %v273_v13 = vrot.slane %v272_v1, 4  ;;  %vm356_vm6 = vcmask 1044484  }
  0xb6   :  { %v280_v5 = vsel %vm44_vm0, %v256_v2, 0.0  ;;  %v306_v12 = vsel %vm44_vm0, %v261_v3, 0.0  ;;  %vm358_vm7 = vcmask 1045509  }
  0xb7   :  { %v281_v8 = vadd.f32 %v280_v5, %v279_v4  ;;  %v206_v9 = vpop.permute.xlu1 %205  ;;  %v203_v10 = vpop.permute.xlu0 %202  ;;  %v308_v21 = vadd.f32 %v307_v16, %v306_v12  ;;  %v274_v27 = vadd.f32 %v273_v13, %v272_v1  ;;  %v65_v1 = vld [vmem:[#allocation5 + $0x70] sm:$0xff] }
  0xb8   :  { %vm242_vm8 = vcmp.eq.s32.totalorder %v206_v9, 1  ;;  %vm241_vm9 = vcmp.eq.s32.totalorder %v203_v10, 1 }
  0xb9   :  { %v282_v14 = vrot.slane %v281_v8, 4  ;;  %v258_v15 = vsel %vm242_vm8, %v56_v6, 0.0  ;;  %v257_v18 = vsel %vm241_vm9, %v55_v11, 0.0  ;;  %v309_v35 = vrot.slane %v308_v21, 4 }
  0xba   :  { %v289_v17 = vsel %vm44_vm0, %v258_v15, 0.0  ;;  %v288_v22 = vsel %vm44_vm0, %v257_v18, 0.0  ;;  %v275_v41 = vrot.slane %v274_v27, 2  ;;  %vm360_vm8 = vcmask 1046534  }
  0xbb   :  { %v283_v20 = vadd.f32 %v282_v14, %v281_v8  ;;  %v212_v23 = vpop.permute.xlu1 %211  ;;  %v209_v24 = vpop.permute.xlu0 %208  ;;  %v290_v26 = vadd.f32 %v289_v17, %v288_v22  ;;  %v310_v50 = vadd.f32 %v309_v35, %v308_v21  ;;  %vm362_vm9 = vcmask 1047559  }
  0xbc   :  { %vm244_vm10 = vcmp.eq.s32.totalorder %v212_v23, 1  ;;  %vm243_vm11 = vcmp.eq.s32.totalorder %v209_v24, 1  ;;  %v276_v56 = vadd.f32 %v275_v41, %v274_v27 }
  0xbd   :  { %v260_v28 = vsel %vm244_vm10, %v58_v19, 0.0  ;;  %v291_v29 = vrot.slane %v290_v26, 4  ;;  %v259_v31 = vsel %vm243_vm11, %v57_v25, 0.0  ;;  %v284_v34 = vrot.slane %v283_v20, 2 }
  0xbe   :  { %v298_v30 = vsel %vm44_vm0, %v260_v28, 0.0  ;;  %v297_v36 = vsel %vm44_vm0, %v259_v31, 0.0  ;;  %v311_v2 = vrot.slane %v310_v50, 2  ;;  %v277_v13 = vrot.slane %v276_v56, 1 }
  0xbf   :  { %v224_v37 = vpop.permute.xlu1 %223  ;;  %v221_v38 = vpop.permute.xlu0 %220  ;;  %v292_v39 = vadd.f32 %v291_v29, %v290_v26  ;;  %v299_v40 = vadd.f32 %v298_v30, %v297_v36  ;;  %v285_v54 = vadd.f32 %v284_v34, %v283_v20 }
  0xc0   :  { %vm248_vm12 = vcmp.eq.s32.totalorder %v224_v37, 1  ;;  %vm247_vm13 = vcmp.eq.s32.totalorder %v221_v38, 1  ;;  %v312_v21 = vadd.f32 %v311_v2, %v310_v50  ;;  %v278_v25 = vadd.f32 %v277_v13, %v276_v56 }
  0xc1   :  { %v264_v42 = vsel %vm248_vm12, %v62_v32, 0.0  ;;  %v263_v43 = vsel %vm247_vm13, %v61_v33, 0.0  ;;  %v293_v44 = vrot.slane %v292_v39, 2  ;;  %v300_v45 = vrot.slane %v299_v40, 4 }
  0xc2   :  { %v316_v46 = vsel %vm44_vm0, %v264_v42, 0.0  ;;  %v315_v47 = vsel %vm44_vm0, %v263_v43, 0.0  ;;  %v286_v7 = vrot.slane %v285_v54, 1  ;;  %v313_v31 = vrot.slane %v312_v21, 1 }
  0xc3   :  { %v317_v51 = vadd.f32 %v316_v46, %v315_v47  ;;  %v230_v52 = vpop.permute.xlu1 %229  ;;  %v227_v53 = vpop.permute.xlu0 %226  ;;  %v301_v55 = vadd.f32 %v300_v45, %v299_v40  ;;  %v294_v60 = vadd.f32 %v293_v44, %v292_v39  ;;  %v172_v44 = vld [vmem:[#allocation2] sm:$0xff] }
  0xc4   :  { %vm250_vm14 = vcmp.eq.s32.totalorder %v230_v52, 1  ;;  %vm249_vm15 = vcmp.eq.s32.totalorder %v227_v53, 1  ;;  %v287_v22 = vadd.f32 %v286_v7, %v285_v54  ;;  %v314_v39 = vadd.f32 %v313_v31, %v312_v21 }
  0xc5   :  { %v318_v57 = vrot.slane %v317_v51, 4  ;;  %v266_v58 = vsel %vm250_vm14, %v64_v48, 0.0  ;;  %v265_v59 = vsel %vm249_vm15, %v63_v49, 0.0  ;;  %v302_v61 = vrot.slane %v301_v55, 2 }
  0xc6   :  { %v325_v62 = vsel %vm44_vm0, %v266_v58, 0.0  ;;  %v324_v63 = vsel %vm44_vm0, %v265_v59, 0.0  ;;  %v295_v14 = vrot.slane %v294_v60, 1  ;;  %v351_v32 = vsel %vm350_vm3, %v287_v22, %v278_v25 }
  0xc7   :  { %v319_v3 = vadd.f32 %v318_v57, %v317_v51  ;;  %v326_v4 = vadd.f32 %v325_v62, %v324_v63  ;;  %v236_v5 = vpop.permute.xlu1 %235  ;;  %v233_v6 = vpop.permute.xlu0 %232  ;;  %v303_v8 = vadd.f32 %v302_v61, %v301_v55 }
  0xc8   :  { %vm252_vm1 = vcmp.eq.s32.totalorder %v236_v5, 1  ;;  %vm251_vm2 = vcmp.eq.s32.totalorder %v233_v6, 1  ;;  %v296_v26 = vadd.f32 %v295_v14, %v294_v60 }
  0xc9   :  { %v320_v9 = vrot.slane %v319_v3, 2  ;;  %v327_v10 = vrot.slane %v326_v4, 4  ;;  %v268_v11 = vsel %vm252_vm1, %v66_v0, 0.0  ;;  %v267_v12 = vsel %vm251_vm2, %v65_v1, 0.0 }
  0xca   :  { %v334_v15 = vsel %vm44_vm0, %v268_v11, 0.0  ;;  %v333_v16 = vsel %vm44_vm0, %v267_v12, 0.0  ;;  %v304_v17 = vrot.slane %v303_v8, 1  ;;  %v353_v35 = vsel %vm352_vm4, %v296_v26, %v351_v32 }
  0xcb   :  { %v321_v18 = vadd.f32 %v320_v9, %v319_v3  ;;  %v328_v19 = vadd.f32 %v327_v10, %v326_v4  ;;  %v335_v20 = vadd.f32 %v334_v15, %v333_v16 }
  0xcc   :  { %v305_v27 = vadd.f32 %v304_v17, %v303_v8 }
  0xcd   :  { %v329_v23 = vrot.slane %v328_v19, 2  ;;  %v336_v24 = vrot.slane %v335_v20, 4  ;;  %v322_v28 = vrot.slane %v321_v18, 1 }
  0xce   :  { %v355_v36 = vsel %vm354_vm5, %v305_v27, %v353_v35 }
  0xcf   :  { %v330_v29 = vadd.f32 %v329_v23, %v328_v19  ;;  %v337_v30 = vadd.f32 %v336_v24, %v335_v20  ;;  %v323_v37 = vadd.f32 %v322_v28, %v321_v18  ;;  %v357_v42 = vsel %vm356_vm6, %v314_v39, %v355_v36 }
  0xd1   :  { %v331_v33 = vrot.slane %v330_v29, 1  ;;  %v338_v34 = vrot.slane %v337_v30, 2  ;;  %v359_v43 = vsel %vm358_vm7, %v323_v37, %v357_v42 }
  0xd3   :  { %v339_v38 = vadd.f32 %v338_v34, %v337_v30  ;;  %v332_v40 = vadd.f32 %v331_v33, %v330_v29 }
  0xd5   :  { %v340_v41 = vrot.slane %v339_v38, 1  ;;  %v361_v46 = vsel %vm360_vm8, %v332_v40, %v359_v43 }
  0xd7   :  { %v341_v45 = vadd.f32 %v340_v41, %v339_v38 }
  0xd9   :  { %v363_v47 = vsel %vm362_vm9, %v341_v45, %v361_v46 }
  0xda   :  { %v365_v48 = vadd.f32 %v363_v47, %v172_v44 }
  0xdc   :  { %366 = vst.msk [vmem:[#allocation2] sm:$0xff] %vm44_vm0, %v365_v48 }
  0xdd PF:  { %v370_v49 = vld [vmem:[%s593_s1] sm:$0xff]  ;;  %v477_v50 = vmov 0   ;;  %s478_s7 = smov [#allocation8]  }
  0xde   :  { %418 = vset.pattern.permute.xlu0 %v477_v50  ;;  %v371_v51 = vcvt.s32.f32 %v370_v49  ;;  %s389_s8 = sshll.u32 %s478_s7, 4  ;;  %s390_s8 = int_to_ptr.vmem [resolvable:$true] %s389_s8 }
  0xdf   :  { %s445_s9 = scalar_lea.vmem %s390_s8, 128  ;;  %p450_p1 = scmp.lt.s32.totalorder %s390_s8, %s390_s8 }
  0xe0   :  { %419 = vrcp.f32 %v371_v51  ;;  %p446_p0 = scmp.ne.s32.totalorder %s390_s8, %s445_s9  ;;  %p451_p2 = scmp.lt.s32.totalorder %s445_s9, %s445_s9 }
  0xe2   :  { %p452_p3 = por %p451_p2, %p450_p1 }
  0xe3   :  { %v374_v53 = vld [vmem:[#allocation2] sm:$0xff] }
  0xe4   :  { %p453_p4 = pnand %p452_p3, %p446_p0 }
  0xea   :  { %v420_v52 = vpop.eup %419 }
  0xeb   :  { %377 = vperm.xlu0 %418, %v420_v52  }
 0x16a   :  { %v378_v54 = vpop.permute.xlu0 %377 }
 0x16b   :  { %v380_v55 = vmul.f32 %v378_v54, %v374_v53 }
 0x16d   :  { %382 = vst.msk [vmem:[#allocation8] sm:$0xff] %vm44_vm0, %v380_v55 }
 0x16e   :  { %456 = shalt.err (!%p453_p4)
}
 0x16f   :  { %s457_s11 = scalar_lea.hbm %s595_s3, 128 }
 0x170   :  { %p458_p5 = scmp.ne.s32.totalorder %s595_s3, %s457_s11  ;;  %p461_p6 = scmp.lt.u32.totalorder %s457_s11, %s595_s3 }
 0x172   :  { %p463_p7 = pnand %p461_p6, %p458_p5 }
 0x174   :  { %466 = shalt.err (!%p463_p7)
}
 0x175   :  { %392 = dma.vmem_to_hbm [thread:$0]  %s390_s8, 128, %s595_s3, [#allocation7]  }
 0x176   :  { %469 = dma.done.wait [#allocation7], 128  }
 0x177   :  { %470 = vsyncadd [#allocation7], 4294967168 }
 0x178   :  { %396 = vsyncpa [#allocation6], 1 }
 0x179   :  { %397 = vsyncpa [#allocation7], 1 }

</bundles_post_ra>
